<compile_context>
chip_gen: v5e
topology: v5e:2x2
jax: 0.10.0
libtpu: 0.0.40
codegen_flags: <defaults>
</compile_context>

<pallas_src>
import functools

import jax
import jax.numpy as jnp
from jax.experimental import pallas as pl
from jax.experimental.pallas import tpu as pltpu

EPS = 1e-5
_LANE = 128            # lane width; TODO(synk): pad to 256 on v6e/v7x for >=256-ch layers
_NCORES = 2            # leading 'parallel' grid axis of the conv pass (v7x megacore)
_MAX_TILE_M = 512      # conv-pass M tile cap (multiple of 16)
_MAX_TILE_ELEM = 2048  # element-wise pass M tile cap (HBM-bound; amortize step overhead)


def _round_up(x, m):
    return ((x + m - 1) // m) * m


def _default_vmem_limit():
    """Generation-aware scoped-VMEM limit (v5e/v6e: 128 MiB phys, v7x: 64 MiB/TC)."""
    try:
        cap = int(pltpu.get_tpu_info().vmem_capacity_bytes)
    except Exception:
        cap = 64 * 1024 * 1024
    return max(32 * 1024 * 1024, min(cap * 3 // 4, 96 * 1024 * 1024))


_VMEM_LIMIT = _default_vmem_limit()


# ---------------------------------------------------------------------------
# Pallas kernels
# ---------------------------------------------------------------------------
def _conv_stats_kernel(p_ref, w_ref, y_ref, sum_ref, ssq_ref):
    """Fused-tap conv matmul for one M tile + per-channel sum / sum-of-squares.

    Grid = (core, step). Stat blocks are per-core resident accumulators along the
    'arbitrary' step axis; y streams out one bf16 tile per step.
    """
    @pl.when(pl.program_id(1) == 0)
    def _():
        sum_ref[...] = jnp.zeros_like(sum_ref)
        ssq_ref[...] = jnp.zeros_like(ssq_ref)

    acc = jnp.dot(p_ref[...], w_ref[...], preferred_element_type=jnp.float32)
    y_ref[...] = acc.astype(y_ref.dtype)  # bf16 store: halves HBM traffic of y
    # Cross-sublane (XLU) reductions; fine while the MXU is the critical unit.
    sum_ref[...] += jnp.sum(acc, axis=0, keepdims=True)
    ssq_ref[...] += jnp.sum(acc * acc, axis=0, keepdims=True)


def _scale_shift_act_kernel(y_ref, sc_ref, sh_ref, o_ref, *, relu):
    """y * scale + shift (+ ReLU); scale/shift precomputed from batch stats."""
    y = y_ref[...].astype(jnp.float32) * sc_ref[...] + sh_ref[...]
    if relu:
        y = jnp.maximum(y, 0.0)
    o_ref[...] = y.astype(o_ref.dtype)


def _scale_shift_add_relu_kernel(y_ref, sc_ref, sh_ref, r_ref, rsc_ref, rsh_ref, o_ref):
    """BN-apply of the left branch + BN-apply of the shortcut + add + ReLU, fused."""
    left = y_ref[...].astype(jnp.float32) * sc_ref[...] + sh_ref[...]
    right = r_ref[...].astype(jnp.float32) * rsc_ref[...] + rsh_ref[...]
    o_ref[...] = jnp.maximum(left + right, 0.0).astype(o_ref.dtype)


# ---------------------------------------------------------------------------
# pallas_call wrappers
# ---------------------------------------------------------------------------
def _conv_stats(patches, w_mat, tm):
    mp, kc = patches.shape
    cout_p = w_mat.shape[1]
    steps = mp // (_NCORES * tm)
    return pl.pallas_call(
        _conv_stats_kernel,
        grid=(_NCORES, steps),
        in_specs=[
            pl.BlockSpec((tm, kc), lambda c, i: (c * steps + i, 0)),
            pl.BlockSpec((kc, cout_p), lambda c, i: (0, 0)),   # weights stay resident
        ],
        out_specs=[
            pl.BlockSpec((tm, cout_p), lambda c, i: (c * steps + i, 0)),
            pl.BlockSpec((1, cout_p), lambda c, i: (0, c)),    # per-core partial sum
            pl.BlockSpec((1, cout_p), lambda c, i: (0, c)),    # per-core partial ssq
        ],
        out_shape=[
            jax.ShapeDtypeStruct((mp, cout_p), jnp.bfloat16),
            jax.ShapeDtypeStruct((1, _NCORES * cout_p), jnp.float32),
            jax.ShapeDtypeStruct((1, _NCORES * cout_p), jnp.float32),
        ],
        compiler_params=pltpu.CompilerParams(
            dimension_semantics=("parallel", "arbitrary"),
            vmem_limit_bytes=_VMEM_LIMIT),
    )(patches, w_mat)


def _scale_shift_act(y, scale, shift, tm, *, relu, out_dtype):
    mp, cout_p = y.shape
    kern = functools.partial(_scale_shift_act_kernel, relu=relu)
    return pl.pallas_call(
        kern,
        grid=(mp // tm,),
        in_specs=[
            pl.BlockSpec((tm, cout_p), lambda i: (i, 0)),
            pl.BlockSpec((1, cout_p), lambda i: (0, 0)),
            pl.BlockSpec((1, cout_p), lambda i: (0, 0)),
        ],
        out_specs=pl.BlockSpec((tm, cout_p), lambda i: (i, 0)),
        out_shape=jax.ShapeDtypeStruct((mp, cout_p), out_dtype),
        compiler_params=pltpu.CompilerParams(
            dimension_semantics=("parallel",),
            vmem_limit_bytes=_VMEM_LIMIT),
    )(y, scale, shift)


def _scale_shift_add_relu(y, scale, shift, res, rscale, rshift, tm):
    mp, cout_p = y.shape
    return pl.pallas_call(
        _scale_shift_add_relu_kernel,
        grid=(mp // tm,),
        in_specs=[
            pl.BlockSpec((tm, cout_p), lambda i: (i, 0)),
            pl.BlockSpec((1, cout_p), lambda i: (0, 0)),
            pl.BlockSpec((1, cout_p), lambda i: (0, 0)),
            pl.BlockSpec((tm, cout_p), lambda i: (i, 0)),
            pl.BlockSpec((1, cout_p), lambda i: (0, 0)),
            pl.BlockSpec((1, cout_p), lambda i: (0, 0)),
        ],
        out_specs=pl.BlockSpec((tm, cout_p), lambda i: (i, 0)),
        out_shape=jax.ShapeDtypeStruct((mp, cout_p), jnp.float32),
        compiler_params=pltpu.CompilerParams(
            dimension_semantics=("parallel",),
            vmem_limit_bytes=_VMEM_LIMIT),
    )(y, scale, shift, res, rscale, rshift)


# ---------------------------------------------------------------------------
# Glue: im2col (folded taps), padding, weight/param prep (plain JAX)
# ---------------------------------------------------------------------------
def _im2col(x_nhwc, ksize, stride, padding):
    """Returns patches (M, ksize*ksize*C) with (kh, kw, c) ordering, plus (Ho, Wo)."""
    # TODO(synk): build patch tiles inside the conv kernel (haloed window DMA) to
    # avoid the K-fold HBM read amplification of this materialized patch stack.
    n, h, w, c = x_nhwc.shape
    ho = (h + 2 * padding - ksize) // stride + 1
    wo = (w + 2 * padding - ksize) // stride + 1
    xp = jnp.pad(x_nhwc, ((0, 0), (padding, padding), (padding, padding), (0, 0)))
    cols = []
    for kh in range(ksize):
        for kw in range(ksize):
            sl = xp[:, kh:kh + stride * (ho - 1) + 1:stride,
                       kw:kw + stride * (wo - 1) + 1:stride, :]
            cols.append(sl.reshape(n * ho * wo, c))
    return jnp.concatenate(cols, axis=1), (ho, wo)


def _pad2d(a, rows, cols, dtype):
    r, c = a.shape
    return jnp.pad(a, ((0, rows - r), (0, cols - c))).astype(dtype)


def _prep_weight(w_oihw, kc_p, cout_p):
    """(Cout, Cin, KH, KW) -> zero-padded (kc_p, cout_p) bf16, (kh, kw, cin) order."""
    cout, cin, kh, kw = w_oihw.shape
    w = jnp.transpose(w_oihw, (2, 3, 1, 0)).reshape(kh * kw * cin, cout)
    return _pad2d(w.astype(jnp.float32), kc_p, cout_p, jnp.bfloat16)


def _prep_gb(g, b, cout_p):
    g = jnp.pad(g.astype(jnp.float32), (0, cout_p - g.shape[0])).reshape(1, cout_p)
    b = jnp.pad(b.astype(jnp.float32), (0, cout_p - b.shape[0])).reshape(1, cout_p)
    return g, b


def _bn_scale_shift(psum, pssq, gamma, beta, m, cout_p):
    """Reduce per-core partial stats and fold BN into per-channel scale/shift."""
    ssum = psum.reshape(_NCORES, cout_p).sum(axis=0, keepdims=True)
    ssq = pssq.reshape(_NCORES, cout_p).sum(axis=0, keepdims=True)
    mean = ssum / m
    # TODO(synk): single-pass E[x^2]-mean^2 can cancel for very large M; use a
    # Welford-style merge if tighter accuracy is needed on real-sized layers.
    var = jnp.maximum(ssq / m - mean * mean, 0.0)
    scale = gamma * jax.lax.rsqrt(var + EPS)
    shift = beta - mean * scale
    return scale, shift


def _elem_tile(mp, tm):
    """Largest multiple of tm that divides mp and is <= _MAX_TILE_ELEM."""
    best = tm
    cand = (min(_MAX_TILE_ELEM, mp) // tm) * tm
    while cand > tm:
        if mp % cand == 0:
            return cand
        cand -= tm
    return best


def _conv_bn_block(x_img, w_oihw, gamma, beta, ksize, stride, padding, tm=None):
    """conv (folded-tap matmul) + batch stats; returns (y_bf16, scale, shift, meta)."""
    n = x_img.shape[0]
    patches, (ho, wo) = _im2col(x_img, ksize, stride, padding)
    m, kc = patches.shape
    kc_p = _round_up(kc, _LANE)
    cout = w_oihw.shape[0]
    cout_p = _round_up(cout, _LANE)
    if tm is None:
        tm = min(_MAX_TILE_M, _round_up(-(-m // _NCORES), 16))  # multiple of 16 (bf16 tile)
    mp = _round_up(m, _NCORES * tm)
    p = _pad2d(patches, mp, kc_p, jnp.bfloat16)   # zero rows/cols: neutral for stats
    wmat = _prep_weight(w_oihw, kc_p, cout_p)
    g, b = _prep_gb(gamma, beta, cout_p)
    y, psum, pssq = _conv_stats(p, wmat, tm)
    scale, shift = _bn_scale_shift(psum, pssq, g, b, m, cout_p)
    meta = dict(n=n, ho=ho, wo=wo, m=m, mp=mp, tm=tm, tm_e=_elem_tile(mp, tm),
                cout=cout, cout_p=cout_p)
    return y, scale, shift, meta


# ---------------------------------------------------------------------------
# ResBlock forward (matches the PyTorch module in fresh/training state)
# ---------------------------------------------------------------------------
def res_block_forward(x_nchw, params, stride):
    x = jnp.transpose(x_nchw, (0, 2, 3, 1)).astype(jnp.float32)   # NCHW -> NHWC
    n, h, w, cin = x.shape
    cout = params["w1"].shape[0]

    # left branch, conv1: 3x3 stride -> BN -> ReLU (out1 stored bf16; the reference
    # conv also consumes bf16 inputs, so this rounding matches)
    y1, sc1, sh1, m1 = _conv_bn_block(x, params["w1"], params["g1"], params["b1"],
                                      3, stride, 1)
    out1 = _scale_shift_act(y1, sc1, sh1, m1["tm_e"], relu=True, out_dtype=jnp.bfloat16)
    out1_img = out1[:m1["m"], :cout].reshape(n, m1["ho"], m1["wo"], cout)
    # TODO(synk): fuse conv1->BN->ReLU->conv2 with pltpu.emit_pipeline so out1
    # never round-trips HBM / is never re-im2col'd.

    # left branch, conv2: 3x3 stride 1 (BN finalized in the fused add kernel below)
    y2, sc2, sh2, m2 = _conv_bn_block(out1_img, params["w2"], params["g2"], params["b2"],
                                      3, 1, 1)
    assert m2["m"] == m1["m"] and m2["mp"] == m1["mp"]

    # shortcut branch: its BN is fused into the final add+ReLU kernel, so the
    # normalized residual is never materialized in HBM.
    if stride != 1 or cin != cout:
        ys, rsc, rsh, ms = _conv_bn_block(x, params["ws"], params["gs"], params["bs"],
                                          1, stride, 0, tm=m2["tm"])
        assert ms["m"] == m2["m"] and ms["mp"] == m2["mp"]
        res = ys
    else:
        res = _pad2d(x.reshape(n * h * w, cin), m2["mp"], m2["cout_p"], jnp.float32)
        rsc = jnp.ones((1, m2["cout_p"]), jnp.float32)
        rsh = jnp.zeros((1, m2["cout_p"]), jnp.float32)

    # conv2 BN + shortcut BN + residual add + ReLU fused in one element-wise pass
    out = _scale_shift_add_relu(y2, sc2, sh2, res, rsc, rsh, m2["tm_e"])
    out_img = out[:m2["m"], :cout].reshape(n, m2["ho"], m2["wo"], cout)
    return jnp.transpose(out_img, (0, 3, 1, 2))                    # NHWC -> NCHW


# ---------------------------------------------------------------------------
# Pure-JAX reference (same algorithm; convs also bf16-in / f32-accumulate to
# match the kernel's MXU precision)
# ---------------------------------------------------------------------------
def _conv_ref(x, w, stride, padding):
    return jax.lax.conv_general_dilated(
        x.astype(jnp.bfloat16), w.astype(jnp.bfloat16),
        (stride, stride), [(padding, padding)] * 2,
        dimension_numbers=("NCHW", "OIHW", "NCHW"),
        preferred_element_type=jnp.float32)


def _bn_train_ref(y, gamma, beta):
    mean = y.mean(axis=(0, 2, 3), keepdims=True)
    var = jnp.square(y - mean).mean(axis=(0, 2, 3), keepdims=True)
    return ((y - mean) * jax.lax.rsqrt(var + EPS)
            * gamma.reshape(1, -1, 1, 1) + beta.reshape(1, -1, 1, 1))


def res_block_reference(x, params, stride):
    cin = x.shape[1]
    cout = params["w1"].shape[0]
    out = _conv_ref(x, params["w1"], stride, 1)
    out = jax.nn.relu(_bn_train_ref(out, params["g1"], params["b1"]))
    out = _conv_ref(out, params["w2"], 1, 1)
    out = _bn_train_ref(out, params["g2"], params["b2"])
    if stride != 1 or cin != cout:
        sc = _bn_train_ref(_conv_ref(x, params["ws"], stride, 0),
                           params["gs"], params["bs"])
    else:
        sc = x
    return jax.nn.relu(out + sc)


# ---------------------------------------------------------------------------
if __name__ == "__main__":
    key = jax.random.PRNGKey(0)

    def make_params(key, cin, cout, with_shortcut):
        k1, k2, k3 = jax.random.split(key, 3)
        p = {
            "w1": jax.random.normal(k1, (cout, cin, 3, 3), jnp.float32) * 0.1,
            "g1": jnp.ones((cout,), jnp.float32),
            "b1": jnp.zeros((cout,), jnp.float32),
            "w2": jax.random.normal(k2, (cout, cout, 3, 3), jnp.float32) * 0.1,
            "g2": jnp.ones((cout,), jnp.float32),
            "b2": jnp.zeros((cout,), jnp.float32),
        }
        if with_shortcut:
            p["ws"] = jax.random.normal(k3, (cout, cin, 1, 1), jnp.float32) * 0.1
            p["gs"] = jnp.ones((cout,), jnp.float32)
            p["bs"] = jnp.zeros((cout,), jnp.float32)
        return p

    # Case 1: downsampling block (stride=2, 4 -> 8 channels, 1x1-conv shortcut)
    kp1, kx1, kp2, kx2 = jax.random.split(key, 4)
    n, cin, h, w, cout, stride = 2, 4, 16, 16, 8, 2
    params1 = make_params(kp1, cin, cout, with_shortcut=True)
    x1 = jax.random.normal(kx1, (n, cin, h, w), jnp.float32)
    y1 = jax.block_until_ready(res_block_forward(x1, params1, stride))
    y1_ref = jax.block_until_ready(res_block_reference(x1, params1, stride))
    assert y1.shape == y1_ref.shape == (n, cout, h // stride, w // stride)
    err1 = float(jnp.max(jnp.abs(y1 - y1_ref)))
    assert err1 < 5e-2, f"case1 mismatch vs reference, max abs err = {err1}"

    # Case 2: identity-shortcut block (stride=1, 8 -> 8 channels)
    c2 = 8
    params2 = make_params(kp2, c2, c2, with_shortcut=False)
    x2 = jax.random.normal(kx2, (n, c2, h, w), jnp.float32)
    y2 = jax.block_until_ready(res_block_forward(x2, params2, 1))
    y2_ref = jax.block_until_ready(res_block_reference(x2, params2, 1))
    assert y2.shape == y2_ref.shape == (n, c2, h, w)
    err2 = float(jnp.max(jnp.abs(y2 - y2_ref)))
    assert err2 < 5e-2, f"case2 mismatch vs reference, max abs err = {err2}"

    print("KERNEL_OK")
</pallas_src>

<mosaic_0001>
module attributes {stable_mosaic.version = 11 : i64} {
  func.func @_conv_stats_kernel(%arg0: i32, %arg1: i32, %arg2: memref<64x128xbf16, #tpu.memory_space<vmem>>, %arg3: memref<128x128xbf16, #tpu.memory_space<vmem>>, %arg4: memref<64x128xbf16, #tpu.memory_space<vmem>>, %arg5: memref<1x128xf32, #tpu.memory_space<vmem>>, %arg6: memref<1x128xf32, #tpu.memory_space<vmem>>) attributes {dimension_semantics = [#tpu.dimension_semantics<parallel>, #tpu.dimension_semantics<arbitrary>], iteration_bounds = array<i64: 2, 1>, scalar_prefetch = 0 : i64, scratch_operands = 0 : i64, tpu.core_type = #tpu.core_type<tc>, window_params = [{transform_indices = @transform_0, window_bounds = array<i64: 64, 128>}, {pipeline_mode = #tpu.pipeline_mode<synchronous>, transform_indices = @transform_1, window_bounds = array<i64: 128, 128>}, {transform_indices = @transform_2, window_bounds = array<i64: 64, 128>}, {transform_indices = @transform_3, window_bounds = array<i64: 1, 128>}, {transform_indices = @transform_4, window_bounds = array<i64: 1, 128>}]} {
    %c0_i32 = arith.constant 0 : i32
    %0 = arith.cmpi eq, %arg1, %c0_i32 : i32
    %1 = arith.extui %0 : i1 to i32
    %c0_i32_0 = arith.constant 0 : i32
    %2 = arith.cmpi ne, %1, %c0_i32_0 : i32
    scf.if %2 {
      %cst_16 = arith.constant 0.000000e+00 : f32
      %19 = vector.broadcast %cst_16 : f32 to vector<1x128xf32>
      %c0_17 = arith.constant 0 : index
      %c0_18 = arith.constant 0 : index
      %20 = vector.load %arg5[%c0_17, %c0_18] : memref<1x128xf32, #tpu.memory_space<vmem>>, vector<1x128xf32>
      tpu.vector_store %arg5[%c0_17, %c0_18], %19 {strides = array<i32>} : memref<1x128xf32, #tpu.memory_space<vmem>>, vector<1x128xf32>,
      %cst_19 = arith.constant 0.000000e+00 : f32
      %21 = vector.broadcast %cst_19 : f32 to vector<1x128xf32>
      %c0_20 = arith.constant 0 : index
      %c0_21 = arith.constant 0 : index
      %22 = vector.load %arg6[%c0_20, %c0_21] : memref<1x128xf32, #tpu.memory_space<vmem>>, vector<1x128xf32>
      tpu.vector_store %arg6[%c0_20, %c0_21], %21 {strides = array<i32>} : memref<1x128xf32, #tpu.memory_space<vmem>>, vector<1x128xf32>,
    } else {
    }
    %c0 = arith.constant 0 : index
    %c0_1 = arith.constant 0 : index
    %3 = vector.load %arg2[%c0, %c0_1] : memref<64x128xbf16, #tpu.memory_space<vmem>>, vector<64x128xbf16>
    %c0_2 = arith.constant 0 : index
    %c0_3 = arith.constant 0 : index
    %4 = vector.load %arg3[%c0_2, %c0_3] : memref<128x128xbf16, #tpu.memory_space<vmem>>, vector<128x128xbf16>
    %cst = arith.constant dense<0.000000e+00> : vector<64x128xf32>
    %5 = tpu.matmul %3, %4, %cst {dimension_numbers = #tpu.dot_dimension_numbers<[1], [0], [0], [1], [0, 0, 1, 1], [], []>} : vector<64x128xbf16>, vector<128x128xbf16>, vector<64x128xf32> -> vector<64x128xf32>
    %6 = arith.truncf %5 : vector<64x128xf32> to vector<64x128xbf16>
    %c0_4 = arith.constant 0 : index
    %c0_5 = arith.constant 0 : index
    %7 = vector.load %arg4[%c0_4, %c0_5] : memref<64x128xbf16, #tpu.memory_space<vmem>>, vector<64x128xbf16>
    tpu.vector_store %arg4[%c0_4, %c0_5], %6 {strides = array<i32>} : memref<64x128xbf16, #tpu.memory_space<vmem>>, vector<64x128xbf16>,
    %c0_6 = arith.constant 0 : index
    %c0_7 = arith.constant 0 : index
    %8 = vector.load %arg5[%c0_6, %c0_7] : memref<1x128xf32, #tpu.memory_space<vmem>>, vector<1x128xf32>
    %cst_8 = arith.constant dense<0.000000e+00> : vector<128xf32>
    %9 = vector.multi_reduction <add>, %5, %cst_8 [0] : vector<64x128xf32> to vector<128xf32>
    %10 = vector.shape_cast %9 : vector<128xf32> to vector<1x128xf32>
    %11 = arith.addf %8, %10 : vector<1x128xf32>
    %c0_9 = arith.constant 0 : index
    %c0_10 = arith.constant 0 : index
    %12 = vector.load %arg5[%c0_9, %c0_10] : memref<1x128xf32, #tpu.memory_space<vmem>>, vector<1x128xf32>
    tpu.vector_store %arg5[%c0_9, %c0_10], %11 {strides = array<i32>} : memref<1x128xf32, #tpu.memory_space<vmem>>, vector<1x128xf32>,
    %c0_11 = arith.constant 0 : index
    %c0_12 = arith.constant 0 : index
    %13 = vector.load %arg6[%c0_11, %c0_12] : memref<1x128xf32, #tpu.memory_space<vmem>>, vector<1x128xf32>
    %14 = arith.mulf %5, %5 : vector<64x128xf32>
    %cst_13 = arith.constant dense<0.000000e+00> : vector<128xf32>
    %15 = vector.multi_reduction <add>, %14, %cst_13 [0] : vector<64x128xf32> to vector<128xf32>
    %16 = vector.shape_cast %15 : vector<128xf32> to vector<1x128xf32>
    %17 = arith.addf %13, %16 : vector<1x128xf32>
    %c0_14 = arith.constant 0 : index
    %c0_15 = arith.constant 0 : index
    %18 = vector.load %arg6[%c0_14, %c0_15] : memref<1x128xf32, #tpu.memory_space<vmem>>, vector<1x128xf32>
    tpu.vector_store %arg6[%c0_14, %c0_15], %17 {strides = array<i32>} : memref<1x128xf32, #tpu.memory_space<vmem>>, vector<1x128xf32>,
    return
  }
  func.func @transform_0(%arg0: i32, %arg1: i32) -> (i32, i32) {
    %c1_i32 = arith.constant 1 : i32
    %0 = arith.muli %arg0, %c1_i32 : i32
    %1 = arith.addi %0, %arg1 : i32
    %c0_i32 = arith.constant 0 : i32
    %c0_i32_0 = arith.constant 0 : i32
    return %1, %c0_i32 : i32, i32
  }
  func.func @transform_1(%arg0: i32, %arg1: i32) -> (i32, i32) {
    %c0_i32 = arith.constant 0 : i32
    %c0_i32_0 = arith.constant 0 : i32
    %c0_i32_1 = arith.constant 0 : i32
    return %c0_i32, %c0_i32_0 : i32, i32
  }
  func.func @transform_2(%arg0: i32, %arg1: i32) -> (i32, i32) {
    %c1_i32 = arith.constant 1 : i32
    %0 = arith.muli %arg0, %c1_i32 : i32
    %1 = arith.addi %0, %arg1 : i32
    %c0_i32 = arith.constant 0 : i32
    %c0_i32_0 = arith.constant 0 : i32
    return %1, %c0_i32 : i32, i32
  }
  func.func @transform_3(%arg0: i32, %arg1: i32) -> (i32, i32) {
    %c0_i32 = arith.constant 0 : i32
    %c0_i32_0 = arith.constant 0 : i32
    return %c0_i32, %arg0 : i32, i32
  }
  func.func @transform_4(%arg0: i32, %arg1: i32) -> (i32, i32) {
    %c0_i32 = arith.constant 0 : i32
    %c0_i32_0 = arith.constant 0 : i32
    return %c0_i32, %arg0 : i32, i32
  }
}

</mosaic_0001>

<bundles_post_ra>
// kernel: tpu_custom_call.1
= control target key start
LH: loop header
LB: loop body
LE: loop exit
PB: predicated region body
PF: predicated region fallthrough
CT: control target
= control target key end

     0   :  { %s1333_s0 = inlined_call_operand.hbm [shape: bf16[128,128], index: 0, kind: input, shape index: {}]   ;;  %s1334_s1 = inlined_call_operand.hbm [shape: bf16[128,128], index: 1, kind: input, shape index: {}]   ;;  %s1335_s2 = inlined_call_operand.hbm [shape: bf16[128,128], index: 2, kind: output, shape index: {0}]   ;;  %s1336_s3 = inlined_call_operand.hbm [shape: f32[1,256], index: 3, kind: output, shape index: {1}]   ;;  %s1337_s4 = inlined_call_operand.hbm [shape: f32[1,256], index: 4, kind: output, shape index: {2}]  }
   0x1   :  { %1342 = sst [smem:[#allocation16_spill]] %s1334_s1 }
   0x2   :  { %10 = vsyncpa [#allocation3], 0 }
   0x3   :  { %12 = vsyncpa [#allocation3 + $0x1], 0 }
   0x4   :  { %13 = vsyncpa [#allocation6], 0 }
   0x5   :  { %14 = vsyncpa [#allocation4], 0 }
   0x6   :  { %16 = vsyncpa [#allocation4 + $0x1], 0 }
   0x7   :  { %17 = vsyncpa [#allocation9], 0 }
   0x8   :  { %19 = vsyncpa [#allocation9 + $0x1], 0  ;;  %s1109_s15 = smov 0   ;;  %s1111_s16 = smov 0  }
   0x9   :  { %s1113_s17 = smov 0   ;;  %s1115_s18 = smov 0  }
   0xa   :  { %s1117_s19 = smov 0   ;;  %s1119_s20 = smov 0  }
   0xb LB: > { %s1140_s21 = sadd.s32 4294967295, %s1076_s20   ;;  %s1338_s22 = sadd.s32 4294967294, %s1076_s20   ;;  %s1076_s20 = sphi %s1119_s20, %s25_s20   ;;  %s1072_s19 = sphi %s1117_s19, %s1358_s19   ;;  %s1068_s18 = sphi %s1115_s18, %s1357_s18   ;;  %s1064_s17 = sphi %s1113_s17, %s1356_s17   ;;  %s1060_s16 = sphi %s1111_s16, %s1355_s16   ;;  %s1056_s15 = sphi %s1109_s15, %s1354_s15  }
   0xc   : > { %p59_p0 = scmp.ne.s32.totalorder %s1060_s16, %s1056_s15  ;;  %p60_p1 = scmp.eq.s32.totalorder %s1140_s21, 0 }
   0xd   : > { %p106_p2 = scmp.eq.s32.totalorder %s1140_s21, 1  ;;  %p112_p3 = scmp.eq.s32.totalorder %s1338_s22, 1 }
   0xe   : > { %p1151_p4 = por %p60_p1, %p59_p0  ;;  %p658_p5 = scmp.ge.s32.totalorder %s1076_s20, 1 }
   0xf   : > { %p1156_p6 = por %p112_p3, %p59_p0  ;;  %p171_p7 = scmp.lt.s32.totalorder %s1076_s20, 3 }
  0x10   : > { %s1345_s1 = sld [smem:[#allocation16_spill]]  ;;  %s1078_s29 = smov [#allocation5]  }
  0x11   : > { %p1164_p8 = pnand %p658_p5, %p171_p7  ;;  %s184_s30 = sshll.u32 %s1078_s29, 4  ;;  %s185_s30 = int_to_ptr.vmem [resolvable:$true] %s184_s30 }
  0x12   : > { %p660_p11 = scmp.ge.s32.totalorder %s1076_s20, 2  ;;  %s1339_s5 = smov 64  }
  0x13   : > { %p794_p9 = pneg %p1164_p8  ;;  %s1340_s6 = smov 4  }
  0x14   : > { %s37_s7 = sadd.s32 1, %s1072_s19  ;;  %s46_s8 = sadd.s32 1, %s1064_s17 }
  0x15   : > { %p795_p10 = pnand %p794_p9, %p60_p1  ;;  %p39_p12 = scmp.ge.s32.totalorder %s37_s7, 2 }
  0x16   : > { %s182_s27 = sshll.u32 %s1345_s1, 4  ;;  %p53_p13 = scmp.ne.s32.totalorder %s1064_s17, %s1060_s16  ;;  %s183_s27 = int_to_ptr.hbm [resolvable:$true] %s182_s27 }
  0x17   : > { %797 = dma.hbm_to_vmem [thread:$0]  (!%p795_p10), %s183_s27, 1024, %s185_s30, [#allocation6], %s1339_s5, %s1339_s5, %s1340_s6  }
  0x18   : > { %p54_p0 = scmp.eq.s32.totalorder %s1076_s20, 0  ;;  %s1360_s7 = smov (%p39_p12, %s37_s7), 0 }
  0x19   : > { %1347 = sst [smem:[#allocation15_spill]] %s1360_s7  ;;  %p1189_p5 = por %p106_p2, %p53_p13 }
  0x1a   : > { %p1183_p3 = por %p54_p0, %p53_p13  ;;  %s43_s11 = ssub.s32 %s1072_s19, %s1360_s7 }
  0x1b   : > { %p813_p7 = scmp.lt.s32.totalorder %s1076_s20, 2  ;;  %p44_p9 = scmp.eq.s32.totalorder %s43_s11, 0 }
  0x1c   : > { %s198_s12 = sand.u32 1, %s1064_s17   ;;  %s721_s25 = sshll.u32 %s1072_s19, 5 }
  0x1d   : > { %s661_s13 = sshll.u32 %s198_s12, 5  ;;  %s208_s29 = scalar_lea.hbm %s1333_s0, %s721_s25 }
  0x1e   : > { %s1198_s14 = scalar_select %p44_p9, %s1064_s17, %s46_s8  }
  0x1f   : > { %s202_s30 = scalar_lea.vmem [#allocation2], %s661_s13  ;;  %s209_s5 = sshll.u32 %s208_s29, 4  ;;  %s210_s5 = int_to_ptr.hbm [resolvable:$true] %s209_s5 }
  0x20   : > { %s211_s22 = sshll.u32 %s202_s30, 4  ;;  %p799_p2 = pnand %p813_p7, %p1183_p3  ;;  %s212_s22 = int_to_ptr.vmem [resolvable:$true] %s211_s22 }
  0x21   : > { %s199_s6 = scalar_lea.sflag [#allocation3], %s198_s12  ;;  %s1350_s1 = smov 4  }
  0x22   : > { %s1351_s7 = smov 64   ;;  %223 = sbr.rel (%p1164_p8) target bundleno = 251 (0xfb), region = 28 }
  0x23   : > { %801 = dma.hbm_to_vmem [thread:$0]  (!%p799_p2), %s210_s5, 512, %s212_s22, %s199_s6, %s1351_s7, %s1351_s7, %s1350_s1  }
  0x24   : > { %s1212_s8 = sand.u32 (!%p1164_p8), 1, %s1060_s16  }
  0x25   : > { %s665_s11 = sshll.u32 (!%p1164_p8), %s1212_s8, 5  ;;  %s226_s13 = scalar_lea.sflag (!%p1164_p8), [#allocation3], %s1212_s8 }
  0x26   : > { %s1218_s9 = scalar_lea.vmem (!%p1164_p8), [#allocation2], %s665_s11 }
  0x27   : > { %1039 = dma.done.wait (%p1151_p4), %s226_s13, 512  }
  0x28   : > { %1041 = vsyncadd (%p1151_p4), %s226_s13, 4294966784 }
  0x29   : > { %1043 = dma.done.wait (%p60_p1), [#allocation6], 1024  }
  0x2a   : > { %1045 = vsyncadd (%p60_p1), [#allocation6], 4294966272  ;;  %v733_v0 = vld [vmem:[#allocation5 + $0x38] sm:$0xff]  ;;  %v732_v1 = vld [vmem:[#allocation5 + $0x30] sm:$0xff]  ;;  %s1233_s1 = scalar_lea.vmem [#allocation8], %s1212_s8  ;;  %v1081_v12 = vmov 0.0  }
  0x2b   : > { %374 = vmatpush.bf16.msra.mxu0 %v733_v0  ;;  %758 = vmatpush.bf16.msra.mxu1 %v733_v0  ;;  %v731_v2 = vld [vmem:[#allocation5 + $0x28] sm:$0xff]  ;;  %v730_v3 = vld [vmem:[#allocation5 + $0x20] sm:$0xff]  ;;  %v729_v4 = vld [vmem:[#allocation5 + $0x18] sm:$0xff]  ;;  %276 = vst [vmem:[%s1233_s1] sm:$0x1] %v1081_v12  ;;  %s1237_s22 = scalar_lea.vmem [#allocation10], %s1212_s8  ;;  %s734_s23 = sshll.u32 %s1068_s18, 5 }
  0x2c   : > { %759 = vmatpush.bf16.msra.mxu2 %v733_v0  ;;  %760 = vmatpush.bf16.msra.mxu3 %v733_v0  ;;  %v728_v5 = vld [vmem:[#allocation5 + $0x10] sm:$0xff]  ;;  %v727_v6 = vld [vmem:[#allocation5 + $0x8] sm:$0xff]  ;;  %v726_v7 = vld [vmem:[#allocation5] sm:$0xff]  ;;  %277 = vst [vmem:[%s1237_s22] sm:$0x1] %v1081_v12  ;;  %s255_s28 = scalar_lea.vmem [#allocation7], %s665_s11  ;;  %s480_s7 = scalar_lea.hbm %s1335_s2, %s734_s23 }
  0x2d   : > { %v722_v8 = vld [vmem:[%s1218_s9] sm:$0xff]  ;;  %v723_v9 = vld [vmem:[%s1218_s9 + $0x8] sm:$0xff]  ;;  %v724_v10 = vld [vmem:[%s1218_s9 + $0x10] sm:$0xff]  ;;  %s481_s12 = sshll.u32 %s255_s28, 4  ;;  %s483_s25 = sshll.u32 %s480_s7, 4  ;;  %s1246_s12 = int_to_ptr.vmem [resolvable:$true] %s481_s12  ;;  %s484_s25 = int_to_ptr.hbm [resolvable:$true] %s483_s25 }
  0x2e   : > { %v725_v11 = vld [vmem:[%s1218_s9 + $0x18] sm:$0xff]  ;;  %s460_s26 = scalar_lea.sflag [#allocation4], %s1212_s8  ;;  %s944_s27 = sshra.s32 %s484_s25, 4  ;;  %s945_s27 = int_to_ptr.hbm [resolvable:$true] %s944_s27 }
  0x2f   : > { %375 = vmatpush.bf16.msra.mxu0 %v732_v1  ;;  %761 = vmatpush.bf16.msra.mxu1 %v732_v1  ;;  %s946_s29 = scalar_lea.hbm %s945_s27, 32  ;;  %s950_s13 = scalar_lea.hbm %s1335_s2, 64 }
  0x30   : > { %762 = vmatpush.bf16.msra.mxu2 %v732_v1  ;;  %763 = vmatpush.bf16.msra.mxu3 %v732_v1  ;;  %p947_p1 = scmp.ne.s32.totalorder %s945_s27, %s946_s29  ;;  %p951_p10 = scmp.lt.s32.totalorder %s945_s27, %s1335_s2 }
  0x31   : > { %p952_p12 = scmp.lt.s32.totalorder %s950_s13, %s946_s29 }
  0x32   : > { %p948_p4 = pnand %p947_p1, %p1189_p5 }
  0x33   : > { %376 = vmatpush.bf16.msra.mxu0 %v731_v2  ;;  %764 = vmatpush.bf16.msra.mxu1 %v731_v2  ;;  %p953_p13 = por %p952_p12, %p951_p10 }
  0x34   : > { %765 = vmatpush.bf16.msra.mxu2 %v731_v2  ;;  %766 = vmatpush.bf16.msra.mxu3 %v731_v2  ;;  %p949_p8 = pneg %p948_p4 }
  0x36   : > { %p954_p0 = pnand %p953_p13, %p949_p8 }
  0x37   : > { %377 = vmatpush.bf16.msra.mxu0 %v730_v3  ;;  %767 = vmatpush.bf16.msra.mxu1 %v730_v3 }
  0x38   : > { %768 = vmatpush.bf16.msra.mxu2 %v730_v3  ;;  %769 = vmatpush.bf16.msra.mxu3 %v730_v3 }
  0x3b   : > { %378 = vmatpush.bf16.msra.mxu0 %v729_v4  ;;  %770 = vmatpush.bf16.msra.mxu1 %v729_v4 }
  0x3c   : > { %771 = vmatpush.bf16.msra.mxu2 %v729_v4  ;;  %772 = vmatpush.bf16.msra.mxu3 %v729_v4 }
  0x3f   : > { %379 = vmatpush.bf16.msra.mxu0 %v728_v5  ;;  %773 = vmatpush.bf16.msra.mxu1 %v728_v5 }
  0x40   : > { %774 = vmatpush.bf16.msra.mxu2 %v728_v5  ;;  %775 = vmatpush.bf16.msra.mxu3 %v728_v5 }
  0x43   : > { %380 = vmatpush.bf16.msra.mxu0 %v727_v6  ;;  %776 = vmatpush.bf16.msra.mxu1 %v727_v6 }
  0x44   : > { %777 = vmatpush.bf16.msra.mxu2 %v727_v6  ;;  %778 = vmatpush.bf16.msra.mxu3 %v727_v6 }
  0x47   : > { %381 = vmatpush.bf16.msra.mxu0 %v726_v7  ;;  %779 = vmatpush.bf16.msra.mxu1 %v726_v7 }
  0x48   : > { %780 = vmatpush.bf16.msra.mxu2 %v726_v7  ;;  %781 = vmatpush.bf16.msra.mxu3 %v726_v7 }
  0x4a   : > { %382 = vmatmul.bf16.vlgmr.msra.gmra.mxu0 %v722_v8  ;;  %387 = vmatmul.bf16.vlgmr.msra.gmra.mxu1 %v723_v9 }
  0x4b   : > { %392 = vmatmul.bf16.vlgmr.msra.gmra.mxu2 %v724_v10  ;;  %397 = vmatmul.bf16.vlgmr.msra.gmra.mxu3 %v725_v11 }
  0xc7   : > { %v383_v13 = vpop.f32.mrf.mxu0  ;;  %v388_v14 = vpop.f32.mrf.mxu1 }
  0xc8   : > { %v436_v17 = vmul.f32 %v383_v13, %v383_v13  ;;  %v438_v24 = vmul.f32 %v388_v14, %v388_v14 }
  0xce   : > { %v393_v15 = vpop.f32.mrf.mxu2  ;;  %v398_v16 = vpop.f32.mrf.mxu3 }
  0xcf   : > { %v385_v18 = vpop.f32.mrf.mxu0  ;;  %v390_v19 = vpop.f32.mrf.mxu1  ;;  %v440_v30 = vmul.f32 %v393_v15, %v393_v15  ;;  %v442_v40 = vmul.f32 %v398_v16, %v398_v16 }
  0xd0   : > { %v738_v20 = vpack.c.bf16 %v385_v18, %v383_v13  ;;  %v420_v21 = vadd.f32 %v385_v18, %v383_v13  ;;  %v437_v22 = vmul.f32 %v385_v18, %v385_v18  ;;  %v743_v23 = vpack.c.bf16 %v390_v19, %v388_v14 }
  0xd1   : > { %v439_v28 = vmul.f32 %v390_v19, %v390_v19 }
  0xd2   : > { %739 = vst [vmem:[%s255_s28] sm:$0xff] %v738_v20   ;;  %v444_v25 = vadd.f32 %v437_v22, %v436_v17  ;;  %v421_v26 = vadd.f32 %v420_v21, %v388_v14 }
  0xd3   : > { %755 = vst [vmem:[%s255_s28 + $0x8] sm:$0xff] %v743_v23  }
  0xd4   : > { %v422_v27 = vadd.f32 %v421_v26, %v390_v19  ;;  %v445_v29 = vadd.f32 %v444_v25, %v438_v24 }
  0xd6   : > { %v446_v31 = vadd.f32 %v445_v29, %v439_v28  ;;  %v395_v32 = vpop.f32.mrf.mxu2  ;;  %v423_v33 = vadd.f32 %v422_v27, %v393_v15  ;;  %v400_v34 = vpop.f32.mrf.mxu3 }
  0xd7   : > { %v748_v35 = vpack.c.bf16 %v395_v32, %v393_v15  ;;  %v753_v36 = vpack.c.bf16 %v400_v34, %v398_v16  ;;  %v441_v38 = vmul.f32 %v395_v32, %v395_v32 }
  0xd8   : > { %v424_v37 = vadd.f32 %v423_v33, %v395_v32  ;;  %v447_v39 = vadd.f32 %v446_v31, %v440_v30 }
  0xd9   : > { %756 = vst [vmem:[%s255_s28 + $0x10] sm:$0xff] %v748_v35  }
  0xda   : > { %v448_v41 = vadd.f32 %v447_v39, %v441_v38  ;;  %757 = vst [vmem:[%s255_s28 + $0x18] sm:$0xff] %v753_v36   ;;  %v425_v42 = vadd.f32 %v424_v37, %v398_v16 }
  0xdb   : > { %957 = shalt.err (!%p954_p0)
}
  0xdc   : > { %s1082_s8 = smov 64   ;;  %s1083_s28 = smov 4   ;;  %v426_v43 = vadd.f32 %v425_v42, %v400_v34  ;;  %v443_v44 = vmul.f32 %v400_v34, %v400_v34  ;;  %v449_v45 = vadd.f32 %v448_v41, %v442_v40  ;;  %v419_v56 = vld [vmem:[%s1233_s1] sm:$0x1] }
  0xdd   : > { %788 = dma.vmem_to_hbm [thread:$0]  (%p1189_p5), %s1246_s12, 512, %s484_s25, %s460_s26, %s1082_s8, %s1082_s8, %s1083_s28  }
  0xde   : > { %v427_v46 = vrot.slane %v426_v43, 4  ;;  %v450_v47 = vadd.f32 %v449_v45, %v443_v44  ;;  %s495_s7 = scalar_lea.hbm %s1336_s3, %s1068_s18  ;;  %s464_s12 = sand.u32 1, %s1140_s21   ;;  %v435_v59 = vld [vmem:[%s1237_s22] sm:$0x1] }
  0xdf   : > { %s508_s27 = scalar_lea.hbm %s1337_s4, %s1068_s18  ;;  %s497_s29 = sshll.u32 %s1233_s1, 4  ;;  %s498_s29 = int_to_ptr.vmem [resolvable:$true] %s497_s29 }
  0xe0   : > { %v428_v48 = vadd.f32 %v427_v46, %v426_v43  ;;  %v451_v49 = vrot.slane %v450_v47, 4  ;;  %s1271_s30 = sshll.u32 %s495_s7, 4  ;;  %s510_s11 = sshll.u32 %s1237_s22, 4  ;;  %s500_s30 = int_to_ptr.hbm [resolvable:$true] %s1271_s30  ;;  %s1279_s11 = int_to_ptr.vmem [resolvable:$true] %s510_s11 }
  0xe1   : > { %s1275_s13 = sshll.u32 %s508_s27, 4  ;;  %s465_s18 = scalar_lea.sflag [#allocation9], %s464_s12  ;;  %s513_s13 = int_to_ptr.hbm [resolvable:$true] %s1275_s13 }
  0xe2   : > { %v429_v50 = vrot.slane %v428_v48, 2  ;;  %v452_v51 = vadd.f32 %v451_v49, %v450_v47  ;;  %s972_s21 = sshra.s32 %s500_s30, 4  ;;  %s978_s28 = scalar_lea.hbm %s1336_s3, 2  ;;  %s973_s21 = int_to_ptr.hbm [resolvable:$true] %s972_s21 }
  0xe3   : > { %s974_s9 = scalar_lea.hbm %s973_s21, 1  ;;  %p979_p2 = scmp.lt.s32.totalorder %s973_s21, %s1336_s3 }
  0xe4   : > { %v430_v52 = vadd.f32 %v429_v50, %v428_v48  ;;  %v453_v53 = vrot.slane %v452_v51, 2  ;;  %p975_p3 = scmp.ne.s32.totalorder %s973_s21, %s974_s9  ;;  %p980_p1 = scmp.lt.s32.totalorder %s978_s28, %s974_s9 }
  0xe6   : > { %v431_v54 = vrot.slane %v430_v52, 1  ;;  %v454_v55 = vadd.f32 %v453_v53, %v452_v51  ;;  %p976_p7 = pnand %p975_p3, %p1189_p5  ;;  %p981_p4 = por %p980_p1, %p979_p2 }
  0xe8   : > { %v432_v57 = vadd.f32 %v431_v54, %v430_v52  ;;  %v455_v58 = vrot.slane %v454_v55, 1  ;;  %p977_p9 = pneg %p976_p7 }
  0xea   : > { %v433_v60 = vadd.f32 %v432_v57, %v419_v56  ;;  %v456_v61 = vadd.f32 %v455_v58, %v454_v55  ;;  %p982_p8 = pnand %p981_p4, %p977_p9 }
  0xec   : > { %v457_v62 = vadd.f32 %v456_v61, %v435_v59  ;;  %434 = vst [vmem:[%s1233_s1] sm:$0x1] %v433_v60 }
  0xed   : > { %985 = shalt.err (!%p982_p8)
}
  0xee   : > { %789 = dma.vmem_to_hbm [thread:$0]  (%p1189_p5), %s498_s29, 16, %s500_s30, %s465_s18   ;;  %458 = vst [vmem:[%s1237_s22] sm:$0x1] %v457_v62 }
  0xef   : > { %s1000_s1 = sshra.s32 %s513_s13, 4  ;;  %s1006_s26 = scalar_lea.hbm %s1337_s4, 2  ;;  %s1001_s1 = int_to_ptr.hbm [resolvable:$true] %s1000_s1 }
  0xf0   : > { %s1002_s7 = scalar_lea.hbm %s1001_s1, 1  ;;  %p1007_p0 = scmp.lt.s32.totalorder %s1001_s1, %s1337_s4 }
  0xf1   : > { %p1003_p10 = scmp.ne.s32.totalorder %s1001_s1, %s1002_s7  ;;  %p1008_p3 = scmp.lt.s32.totalorder %s1006_s26, %s1002_s7 }
  0xf3   : > { %p1004_p12 = pnand %p1003_p10, %p1189_p5  ;;  %p1009_p7 = por %p1008_p3, %p1007_p0 }
  0xf5   : > { %p1005_p13 = pneg %p1004_p12 }
  0xf7   : > { %p1010_p9 = pnand %p1009_p7, %p1005_p13 }
  0xf9   : > { %1013 = shalt.err (!%p1010_p9)
}
  0xfa   : > { %790 = dma.vmem_to_hbm [thread:$0]  (%p1189_p5), %s1279_s11, 16, %s513_s13, %s465_s18  }
  0xfb PF: > { %s524_s22 = sand.u32 1, %s1056_s15   ;;  %p803_p2 = pnand %p660_p11, %p1156_p6 }
  0xfc   : > { %s525_s29 = scalar_lea.sflag [#allocation4], %s524_s22 }
  0xfd   : > { %p804_p1 = pneg %p803_p2 }
  0xff   : > { %1047 = dma.done.wait (%p804_p1), %s525_s29, 512  }
 0x100   : > { %1049 = vsyncadd (%p804_p1), %s525_s29, 4294966784  ;;  %s1352_s30 = sadd.s32 4294967294, %s1076_s20  }
 0x101   : > { %s534_s9 = sand.u32 1, %s1352_s30  }
 0x102   : > { %s535_s10 = scalar_lea.sflag [#allocation9], %s534_s9 }
 0x103   : > { %1051 = dma.done.wait (%p804_p1), %s535_s10, 32  }
 0x104   : > { %1053 = vsyncadd (%p804_p1), %s535_s10, 4294967264  ;;  %s25_s20 = sadd.s32 1, %s1076_s20   ;;  %s1353_s24 = sld [smem:[#allocation15_spill]] }
 0x105   : > { %p22_p5 = scmp.ge.s32.totalorder %s25_s20, 4   ;;  %s1354_s15 = smov %s1060_s16 }
 0x106   : > { %s1355_s16 = smov %s1064_s17  ;;  %s1356_s17 = smov %s1198_s14 }
 0x107   : > { %s1357_s18 = smov %s1072_s19  ;;  %24 = sbr.rel (!%p22_p5) target bundleno = 11 (0xb), region = 113 }
 0x10a   : > { %s1358_s19 = smov %s1353_s24 }
 0x10c   :  { %549 = vsyncpa [#allocation3], 1 }
 0x10d   :  { %551 = vsyncpa [#allocation3 + $0x1], 1 }
 0x10e   :  { %552 = vsyncpa [#allocation6], 1 }
 0x10f   :  { %553 = vsyncpa [#allocation4], 1 }
 0x110   :  { %555 = vsyncpa [#allocation4 + $0x1], 1 }
 0x111   :  { %556 = vsyncpa [#allocation9], 1 }
 0x112   :  { %558 = vsyncpa [#allocation9 + $0x1], 1 }

</bundles_post_ra>
